<compile_context>
chip_gen: v5e
topology: v5e:2x2
jax: 0.10.0
libtpu: 0.0.40
codegen_flags: <defaults>
</compile_context>

<pallas_src>
import functools
import math

import jax
import jax.numpy as jnp
from jax import lax
from jax.experimental import pallas as pl
from jax.experimental.pallas import tpu as pltpu


def _mha_kernel(x_ref, wqkv_ref, bqkv_ref, wo_ref, bo_ref, bias_ref,
                o_ref, ctx_ref, *, num_heads):
    BB, S, E = x_ref.shape                    # batch block, seq, embed
    D = E // num_heads
    cdt = x_ref.dtype                         # compute dtype (cast host-side)

    wqkv = wqkv_ref[...]                      # (E, 3E)  compute dtype
    bqkv = bqkv_ref[...]                      # (1, 3E)  float32
    wo = wo_ref[...]                          # (E, E)   compute dtype
    bo = bo_ref[...]                          # (1, E)   float32

    for b in range(BB):                       # static batch-block loop
        x = x_ref[b]                          # (S, E), no in-kernel cast

        # One fused QKV projection: N = 3E fills the MXU width (vs N = D
        # per head).  Softmax scale is pre-folded into the Q columns.
        qkv = (jnp.dot(x, wqkv, preferred_element_type=jnp.float32)
               + bqkv).astype(cdt)            # (S, 3E)

        bias = bias_ref[b].astype(jnp.float32)  # (S, S), loaded/cast once

        for h in range(num_heads):            # static per-head attention
            q = qkv[:, h * D:(h + 1) * D]                       # (S, D)
            k = qkv[:, E + h * D:E + (h + 1) * D]               # (S, D)
            v = qkv[:, 2 * E + h * D:2 * E + (h + 1) * D]       # (S, D)

            # q @ k^T as an NT dot_general (no materialised transpose of k),
            # plus the pre-fused (edge_bias + mask) additive bias.
            scores = lax.dot_general(
                q, k, dimension_numbers=(((1,), (1,)), ((), ())),
                preferred_element_type=jnp.float32) + bias       # (S, S)

            # Numerically-stable softmax; EUP reciprocal + one Newton step.
            m = jnp.max(scores, axis=-1, keepdims=True)
            p = jnp.exp(scores - m)
            s = jnp.sum(p, axis=-1, keepdims=True)
            r = pl.reciprocal(s, approx=True)
            r = r * (2.0 - s * r)             # Newton refine -> ~f32-exact
            p = p * r

            ctx = jnp.dot(p.astype(cdt), v,
                          preferred_element_type=jnp.float32)    # (S, D) f32
            ctx_ref[:, h * D:(h + 1) * D] = ctx

        # Single wide out-projection (K = E) instead of H (S,D)@(D,E) accums.
        out = (jnp.dot(ctx_ref[...].astype(cdt), wo,
                       preferred_element_type=jnp.float32) + bo)
        o_ref[b] = out.astype(o_ref.dtype)


def graphormer_mha(x, params, edge_bias=None, attn_mask=None, *,
                   num_heads, compute_dtype=None):
    B, S, E = x.shape
    assert E % num_heads == 0
    H = num_heads
    D = E // H
    scale = D ** (-0.5)
    cdt = (jnp.dtype(compute_dtype) if compute_dtype is not None
           else jnp.dtype(x.dtype))

    wq, bq, wk, bk, wv, bv, wo, bo = params

    # Fold the softmax scale into the Q projection (zero kernel cost).
    wq_s = wq.astype(jnp.float32) * scale
    bq_s = bq.astype(jnp.float32).reshape(1, E) * scale

    # Fused QKV weight / bias, cast to the compute dtype on the HOST so HBM
    # storage, DMA bytes and VMEM footprint are halved when cdt = bf16.
    wqkv = jnp.concatenate(
        [wq_s, wk.astype(jnp.float32), wv.astype(jnp.float32)],
        axis=1).astype(cdt)                                      # (E, 3E)
    bqkv = jnp.concatenate(
        [bq_s, bk.astype(jnp.float32).reshape(1, E),
         bv.astype(jnp.float32).reshape(1, E)], axis=1)          # (1, 3E) f32

    wo_c = wo.astype(cdt)                                        # (E, E)
    bo_f = bo.astype(jnp.float32).reshape(1, E)                  # (1, E) f32

    # Fuse the attention mask into the edge bias (one (S,S) DMA per batch
    # element instead of two); finite -1e30 keeps fully-masked rows NaN-free.
    # Explicit dtype decision: stored in the compute dtype (bf16 keeps -1e30
    # representable but drops ~3 decimal digits of edge-bias precision).
    if edge_bias is None:
        bias = jnp.zeros((B, S, S), jnp.float32)
    else:
        bias = edge_bias.astype(jnp.float32)
    if attn_mask is not None:
        bias = bias + jnp.where(attn_mask == 0,
                                jnp.float32(-1e30), jnp.float32(0.0))
    bias = bias.astype(cdt)

    x_c = x.astype(cdt)

    # Block several batch elements per grid step for small S to amortise the
    # per-step pipeline overhead (and per-step weight/spec bookkeeping).
    if S <= 128:
        bb = max(1, min(B, 1024 // max(S, 1)))
        while B % bb:
            bb -= 1
    else:
        bb = 1

    # Derive the scoped-VMEM limit from the actual block sizes instead of
    # hardcoding 32 MiB (review: the cap, not the hardware, was binding).
    csz = jnp.dtype(cdt).itemsize
    osz = jnp.dtype(x.dtype).itemsize
    est = (2 * bb * (S * E * csz + S * S * csz + S * E * osz)        # dbl-buf blocks
           + 2 * (E * 3 * E * csz + 3 * E * 4 + E * E * csz + E * 4)  # weights
           + S * E * 4                                                # ctx scratch
           + S * 3 * E * 4 + 2 * S * S * 4 + S * E * 4)               # transients
    vmem_limit = int(min(max(3 * est // 2, 32 * 1024 * 1024),
                         96 * 1024 * 1024))

    kernel = functools.partial(_mha_kernel, num_heads=H)

    out = pl.pallas_call(
        kernel,
        out_shape=jax.ShapeDtypeStruct((B, S, E), x.dtype),
        grid=(B // bb,),
        in_specs=[
            pl.BlockSpec((bb, S, E), lambda i: (i, 0, 0)),    # x (compute dtype)
            pl.BlockSpec((E, 3 * E), lambda i: (0, 0)),       # fused QKV weight
            pl.BlockSpec((1, 3 * E), lambda i: (0, 0)),       # fused QKV bias
            pl.BlockSpec((E, E), lambda i: (0, 0)),           # out-proj weight
            pl.BlockSpec((1, E), lambda i: (0, 0)),           # out-proj bias
            pl.BlockSpec((bb, S, S), lambda i: (i, 0, 0)),    # fused bias+mask
        ],
        out_specs=pl.BlockSpec((bb, S, E), lambda i: (i, 0, 0)),
        scratch_shapes=[pltpu.VMEM((S, E), jnp.float32)],     # context panel
        compiler_params=pltpu.CompilerParams(
            dimension_semantics=("parallel",),
            vmem_limit_bytes=vmem_limit),
    )(x_c, wqkv, bqkv, wo_c, bo_f, bias)

    return out


def _reference_mha(x, params, edge_bias, attn_mask, *, num_heads):
    """Pure-JAX reference mirroring the PyTorch forward (eval mode)."""
    wq, bq, wk, bk, wv, bv, wo, bo = params
    B, S, E = x.shape
    D = E // num_heads
    scale = D ** (-0.5)

    def proj(w, b):
        return (x @ w + b).reshape(B, S, num_heads, D).transpose(0, 2, 1, 3)

    q, k, v = proj(wq, bq), proj(wk, bk), proj(wv, bv)
    scores = jnp.einsum('bhqd,bhkd->bhqk', q, k) * scale
    if edge_bias is not None:
        scores = scores + edge_bias[:, None, :, :]
    if attn_mask is not None:
        scores = jnp.where(attn_mask[:, None, :, :] == 0, -jnp.inf, scores)
    probs = jax.nn.softmax(scores, axis=-1)
    out = jnp.einsum('bhqk,bhkd->bhqd', probs, v)
    out = out.transpose(0, 2, 1, 3).reshape(B, S, E)
    return out @ wo + bo


if __name__ == "__main__":
    B, S, E, H = 2, 8, 32, 4

    key = jax.random.PRNGKey(0)
    keys = jax.random.split(key, 12)

    x = jax.random.normal(keys[0], (B, S, E), dtype=jnp.float32)

    def lin_params(kw, kb):
        w = (jax.random.normal(kw, (E, E), dtype=jnp.float32)
             * (1.0 / math.sqrt(E)))        # pre-transposed: (in, out)
        b = jax.random.normal(kb, (1, E), dtype=jnp.float32) * 0.02
        return w, b

    wq, bq = lin_params(keys[1], keys[2])
    wk, bk = lin_params(keys[3], keys[4])
    wv, bv = lin_params(keys[5], keys[6])
    wo, bo = lin_params(keys[7], keys[8])
    params = (wq, bq, wk, bk, wv, bv, wo, bo)

    edge_bias = jax.random.normal(keys[9], (B, S, S), dtype=jnp.float32) * 0.1
    # causal-style mask: every row has at least one unmasked entry
    attn_mask = jnp.tril(jnp.ones((S, S), dtype=jnp.float32))[None].repeat(B, axis=0)

    ref = _reference_mha(x, params, edge_bias, attn_mask, num_heads=H)

    # Full-precision path (compute dtype = input dtype).
    out = graphormer_mha(x, params, edge_bias, attn_mask, num_heads=H)
    out = jax.block_until_ready(out)
    assert out.shape == (B, S, E)
    assert jnp.allclose(out, ref, atol=2e-3, rtol=2e-3), "mismatch vs reference"

    # bf16-MXU path (recommended on v6e/v7x): bf16 operands, f32 accumulation.
    out_bf16 = graphormer_mha(x, params, edge_bias, attn_mask, num_heads=H,
                              compute_dtype=jnp.bfloat16)
    out_bf16 = jax.block_until_ready(out_bf16)
    assert out_bf16.shape == (B, S, E)
    assert jnp.allclose(out_bf16, ref, atol=1e-1, rtol=1e-1), "bf16 path diverged"

    print("KERNEL_OK")
</pallas_src>

<mosaic_0001>
module attributes {stable_mosaic.version = 11 : i64} {
  func.func @_mha_kernel(%arg0: i32, %arg1: memref<2x8x32xf32, #tpu.memory_space<vmem>>, %arg2: memref<32x96xf32, #tpu.memory_space<vmem>>, %arg3: memref<1x96xf32, #tpu.memory_space<vmem>>, %arg4: memref<32x32xf32, #tpu.memory_space<vmem>>, %arg5: memref<1x32xf32, #tpu.memory_space<vmem>>, %arg6: memref<2x8x8xf32, #tpu.memory_space<vmem>>, %arg7: memref<2x8x32xf32, #tpu.memory_space<vmem>>, %arg8: memref<8x32xf32, #tpu.memory_space<vmem>>) attributes {dimension_semantics = [#tpu.dimension_semantics<parallel>], iteration_bounds = array<i64: 1>, scalar_prefetch = 0 : i64, scratch_operands = 1 : i64, tpu.core_type = #tpu.core_type<tc>, window_params = [{transform_indices = @transform_0, window_bounds = array<i64: 2, 8, 32>}, {pipeline_mode = #tpu.pipeline_mode<synchronous>, transform_indices = @transform_1, window_bounds = array<i64: 32, 96>}, {pipeline_mode = #tpu.pipeline_mode<synchronous>, transform_indices = @transform_2, window_bounds = array<i64: 1, 96>}, {pipeline_mode = #tpu.pipeline_mode<synchronous>, transform_indices = @transform_3, window_bounds = array<i64: 32, 32>}, {pipeline_mode = #tpu.pipeline_mode<synchronous>, transform_indices = @transform_4, window_bounds = array<i64: 1, 32>}, {transform_indices = @transform_5, window_bounds = array<i64: 2, 8, 8>}, {transform_indices = @transform_6, window_bounds = array<i64: 2, 8, 32>}]} {
    %c0 = arith.constant 0 : index
    %c0_0 = arith.constant 0 : index
    %0 = vector.load %arg2[%c0, %c0_0] : memref<32x96xf32, #tpu.memory_space<vmem>>, vector<32x96xf32>
    %c0_1 = arith.constant 0 : index
    %c0_2 = arith.constant 0 : index
    %1 = vector.load %arg3[%c0_1, %c0_2] : memref<1x96xf32, #tpu.memory_space<vmem>>, vector<1x96xf32>
    %c0_3 = arith.constant 0 : index
    %c0_4 = arith.constant 0 : index
    %2 = vector.load %arg4[%c0_3, %c0_4] : memref<32x32xf32, #tpu.memory_space<vmem>>, vector<32x32xf32>
    %c0_5 = arith.constant 0 : index
    %c0_6 = arith.constant 0 : index
    %3 = vector.load %arg5[%c0_5, %c0_6] : memref<1x32xf32, #tpu.memory_space<vmem>>, vector<1x32xf32>
    %c0_7 = arith.constant 0 : index
    %c0_8 = arith.constant 0 : index
    %c0_9 = arith.constant 0 : index
    %4 = vector.load %arg1[%c0_7, %c0_8, %c0_9] : memref<2x8x32xf32, #tpu.memory_space<vmem>>, vector<1x8x32xf32>
    %5 = vector.shape_cast %4 : vector<1x8x32xf32> to vector<8x32xf32>
    %cst = arith.constant dense<0.000000e+00> : vector<8x96xf32>
    %6 = tpu.matmul %5, %0, %cst {dimension_numbers = #tpu.dot_dimension_numbers<[1], [0], [0], [1], [0, 0, 1, 1], [], []>} : vector<8x32xf32>, vector<32x96xf32>, vector<8x96xf32> -> vector<8x96xf32>
    %7 = vector.broadcast %1 : vector<1x96xf32> to vector<8x96xf32>
    %8 = arith.addf %6, %7 : vector<8x96xf32>
    %c0_10 = arith.constant 0 : index
    %c0_11 = arith.constant 0 : index
    %c0_12 = arith.constant 0 : index
    %9 = vector.load %arg6[%c0_10, %c0_11, %c0_12] : memref<2x8x8xf32, #tpu.memory_space<vmem>>, vector<1x8x8xf32>
    %10 = vector.shape_cast %9 : vector<1x8x8xf32> to vector<8x8xf32>
    %11 = vector.extract_strided_slice %8 {offsets = [0, 0], sizes = [8, 8], strides = [1, 1]} : vector<8x96xf32> to vector<8x8xf32>
    %12 = vector.extract_strided_slice %8 {offsets = [0, 32], sizes = [8, 8], strides = [1, 1]} : vector<8x96xf32> to vector<8x8xf32>
    %13 = vector.extract_strided_slice %8 {offsets = [0, 64], sizes = [8, 8], strides = [1, 1]} : vector<8x96xf32> to vector<8x8xf32>
    %cst_13 = arith.constant dense<0.000000e+00> : vector<8x8xf32>
    %14 = tpu.matmul %11, %12, %cst_13 {dimension_numbers = #tpu.dot_dimension_numbers<[1], [1], [0], [0], [0, 0, 1, 0], [], []>} : vector<8x8xf32>, vector<8x8xf32>, vector<8x8xf32> -> vector<8x8xf32>
    %15 = arith.addf %14, %10 : vector<8x8xf32>
    %cst_14 = arith.constant dense<0xFF800000> : vector<8xf32>
    %16 = vector.multi_reduction <maximumf>, %15, %cst_14 [1] : vector<8x8xf32> to vector<8xf32>
    %17 = vector.shape_cast %16 : vector<8xf32> to vector<8x1xf32>
    %18 = vector.broadcast %17 : vector<8x1xf32> to vector<8x8xf32>
    %19 = arith.subf %15, %18 : vector<8x8xf32>
    %20 = math.exp %19 : vector<8x8xf32>
    %cst_15 = arith.constant dense<0.000000e+00> : vector<8xf32>
    %21 = vector.multi_reduction <add>, %20, %cst_15 [1] : vector<8x8xf32> to vector<8xf32>
    %22 = vector.shape_cast %21 : vector<8xf32> to vector<8x1xf32>
    %23 = tpu.reciprocal %22 {approx = true} : vector<8x1xf32> -> vector<8x1xf32>
    %24 = arith.mulf %22, %23 : vector<8x1xf32>
    %cst_16 = arith.constant 2.000000e+00 : f32
    %25 = vector.broadcast %cst_16 : f32 to vector<8x1xf32>
    %26 = arith.subf %25, %24 : vector<8x1xf32>
    %27 = arith.mulf %23, %26 : vector<8x1xf32>
    %28 = vector.broadcast %27 : vector<8x1xf32> to vector<8x8xf32>
    %29 = arith.mulf %20, %28 : vector<8x8xf32>
    %cst_17 = arith.constant dense<0.000000e+00> : vector<8x8xf32>
    %30 = tpu.matmul %29, %13, %cst_17 {dimension_numbers = #tpu.dot_dimension_numbers<[1], [0], [0], [1], [0, 0, 1, 1], [], []>} : vector<8x8xf32>, vector<8x8xf32>, vector<8x8xf32> -> vector<8x8xf32>
    %c0_18 = arith.constant 0 : index
    %c0_19 = arith.constant 0 : index
    %31 = vector.load %arg8[%c0_18, %c0_19] : memref<8x32xf32, #tpu.memory_space<vmem>>, vector<8x8xf32>
    tpu.vector_store %arg8[%c0_18, %c0_19], %30 {strides = array<i32>} : memref<8x32xf32, #tpu.memory_space<vmem>>, vector<8x8xf32>,
    %32 = vector.extract_strided_slice %8 {offsets = [0, 8], sizes = [8, 8], strides = [1, 1]} : vector<8x96xf32> to vector<8x8xf32>
    %33 = vector.extract_strided_slice %8 {offsets = [0, 40], sizes = [8, 8], strides = [1, 1]} : vector<8x96xf32> to vector<8x8xf32>
    %34 = vector.extract_strided_slice %8 {offsets = [0, 72], sizes = [8, 8], strides = [1, 1]} : vector<8x96xf32> to vector<8x8xf32>
    %cst_20 = arith.constant dense<0.000000e+00> : vector<8x8xf32>
    %35 = tpu.matmul %32, %33, %cst_20 {dimension_numbers = #tpu.dot_dimension_numbers<[1], [1], [0], [0], [0, 0, 1, 0], [], []>} : vector<8x8xf32>, vector<8x8xf32>, vector<8x8xf32> -> vector<8x8xf32>
    %36 = arith.addf %35, %10 : vector<8x8xf32>
    %cst_21 = arith.constant dense<0xFF800000> : vector<8xf32>
    %37 = vector.multi_reduction <maximumf>, %36, %cst_21 [1] : vector<8x8xf32> to vector<8xf32>
    %38 = vector.shape_cast %37 : vector<8xf32> to vector<8x1xf32>
    %39 = vector.broadcast %38 : vector<8x1xf32> to vector<8x8xf32>
    %40 = arith.subf %36, %39 : vector<8x8xf32>
    %41 = math.exp %40 : vector<8x8xf32>
    %cst_22 = arith.constant dense<0.000000e+00> : vector<8xf32>
    %42 = vector.multi_reduction <add>, %41, %cst_22 [1] : vector<8x8xf32> to vector<8xf32>
    %43 = vector.shape_cast %42 : vector<8xf32> to vector<8x1xf32>
    %44 = tpu.reciprocal %43 {approx = true} : vector<8x1xf32> -> vector<8x1xf32>
    %45 = arith.mulf %43, %44 : vector<8x1xf32>
    %cst_23 = arith.constant 2.000000e+00 : f32
    %46 = vector.broadcast %cst_23 : f32 to vector<8x1xf32>
    %47 = arith.subf %46, %45 : vector<8x1xf32>
    %48 = arith.mulf %44, %47 : vector<8x1xf32>
    %49 = vector.broadcast %48 : vector<8x1xf32> to vector<8x8xf32>
    %50 = arith.mulf %41, %49 : vector<8x8xf32>
    %cst_24 = arith.constant dense<0.000000e+00> : vector<8x8xf32>
    %51 = tpu.matmul %50, %34, %cst_24 {dimension_numbers = #tpu.dot_dimension_numbers<[1], [0], [0], [1], [0, 0, 1, 1], [], []>} : vector<8x8xf32>, vector<8x8xf32>, vector<8x8xf32> -> vector<8x8xf32>
    %c0_25 = arith.constant 0 : index
    %c8 = arith.constant 8 : index
    %52 = vector.load %arg8[%c0_25, %c8] : memref<8x32xf32, #tpu.memory_space<vmem>>, vector<8x8xf32>
    tpu.vector_store %arg8[%c0_25, %c8], %51 {strides = array<i32>} : memref<8x32xf32, #tpu.memory_space<vmem>>, vector<8x8xf32>,
    %53 = vector.extract_strided_slice %8 {offsets = [0, 16], sizes = [8, 8], strides = [1, 1]} : vector<8x96xf32> to vector<8x8xf32>
    %54 = vector.extract_strided_slice %8 {offsets = [0, 48], sizes = [8, 8], strides = [1, 1]} : vector<8x96xf32> to vector<8x8xf32>
    %55 = vector.extract_strided_slice %8 {offsets = [0, 80], sizes = [8, 8], strides = [1, 1]} : vector<8x96xf32> to vector<8x8xf32>
    %cst_26 = arith.constant dense<0.000000e+00> : vector<8x8xf32>
    %56 = tpu.matmul %53, %54, %cst_26 {dimension_numbers = #tpu.dot_dimension_numbers<[1], [1], [0], [0], [0, 0, 1, 0], [], []>} : vector<8x8xf32>, vector<8x8xf32>, vector<8x8xf32> -> vector<8x8xf32>
    %57 = arith.addf %56, %10 : vector<8x8xf32>
    %cst_27 = arith.constant dense<0xFF800000> : vector<8xf32>
    %58 = vector.multi_reduction <maximumf>, %57, %cst_27 [1] : vector<8x8xf32> to vector<8xf32>
    %59 = vector.shape_cast %58 : vector<8xf32> to vector<8x1xf32>
    %60 = vector.broadcast %59 : vector<8x1xf32> to vector<8x8xf32>
    %61 = arith.subf %57, %60 : vector<8x8xf32>
    %62 = math.exp %61 : vector<8x8xf32>
    %cst_28 = arith.constant dense<0.000000e+00> : vector<8xf32>
    %63 = vector.multi_reduction <add>, %62, %cst_28 [1] : vector<8x8xf32> to vector<8xf32>
    %64 = vector.shape_cast %63 : vector<8xf32> to vector<8x1xf32>
    %65 = tpu.reciprocal %64 {approx = true} : vector<8x1xf32> -> vector<8x1xf32>
    %66 = arith.mulf %64, %65 : vector<8x1xf32>
    %cst_29 = arith.constant 2.000000e+00 : f32
    %67 = vector.broadcast %cst_29 : f32 to vector<8x1xf32>
    %68 = arith.subf %67, %66 : vector<8x1xf32>
    %69 = arith.mulf %65, %68 : vector<8x1xf32>
    %70 = vector.broadcast %69 : vector<8x1xf32> to vector<8x8xf32>
    %71 = arith.mulf %62, %70 : vector<8x8xf32>
    %cst_30 = arith.constant dense<0.000000e+00> : vector<8x8xf32>
    %72 = tpu.matmul %71, %55, %cst_30 {dimension_numbers = #tpu.dot_dimension_numbers<[1], [0], [0], [1], [0, 0, 1, 1], [], []>} : vector<8x8xf32>, vector<8x8xf32>, vector<8x8xf32> -> vector<8x8xf32>
    %c0_31 = arith.constant 0 : index
    %c16 = arith.constant 16 : index
    %73 = vector.load %arg8[%c0_31, %c16] : memref<8x32xf32, #tpu.memory_space<vmem>>, vector<8x8xf32>
    tpu.vector_store %arg8[%c0_31, %c16], %72 {strides = array<i32>} : memref<8x32xf32, #tpu.memory_space<vmem>>, vector<8x8xf32>,
    %74 = vector.extract_strided_slice %8 {offsets = [0, 24], sizes = [8, 8], strides = [1, 1]} : vector<8x96xf32> to vector<8x8xf32>
    %75 = vector.extract_strided_slice %8 {offsets = [0, 56], sizes = [8, 8], strides = [1, 1]} : vector<8x96xf32> to vector<8x8xf32>
    %76 = vector.extract_strided_slice %8 {offsets = [0, 88], sizes = [8, 8], strides = [1, 1]} : vector<8x96xf32> to vector<8x8xf32>
    %cst_32 = arith.constant dense<0.000000e+00> : vector<8x8xf32>
    %77 = tpu.matmul %74, %75, %cst_32 {dimension_numbers = #tpu.dot_dimension_numbers<[1], [1], [0], [0], [0, 0, 1, 0], [], []>} : vector<8x8xf32>, vector<8x8xf32>, vector<8x8xf32> -> vector<8x8xf32>
    %78 = arith.addf %77, %10 : vector<8x8xf32>
    %cst_33 = arith.constant dense<0xFF800000> : vector<8xf32>
    %79 = vector.multi_reduction <maximumf>, %78, %cst_33 [1] : vector<8x8xf32> to vector<8xf32>
    %80 = vector.shape_cast %79 : vector<8xf32> to vector<8x1xf32>
    %81 = vector.broadcast %80 : vector<8x1xf32> to vector<8x8xf32>
    %82 = arith.subf %78, %81 : vector<8x8xf32>
    %83 = math.exp %82 : vector<8x8xf32>
    %cst_34 = arith.constant dense<0.000000e+00> : vector<8xf32>
    %84 = vector.multi_reduction <add>, %83, %cst_34 [1] : vector<8x8xf32> to vector<8xf32>
    %85 = vector.shape_cast %84 : vector<8xf32> to vector<8x1xf32>
    %86 = tpu.reciprocal %85 {approx = true} : vector<8x1xf32> -> vector<8x1xf32>
    %87 = arith.mulf %85, %86 : vector<8x1xf32>
    %cst_35 = arith.constant 2.000000e+00 : f32
    %88 = vector.broadcast %cst_35 : f32 to vector<8x1xf32>
    %89 = arith.subf %88, %87 : vector<8x1xf32>
    %90 = arith.mulf %86, %89 : vector<8x1xf32>
    %91 = vector.broadcast %90 : vector<8x1xf32> to vector<8x8xf32>
    %92 = arith.mulf %83, %91 : vector<8x8xf32>
    %cst_36 = arith.constant dense<0.000000e+00> : vector<8x8xf32>
    %93 = tpu.matmul %92, %76, %cst_36 {dimension_numbers = #tpu.dot_dimension_numbers<[1], [0], [0], [1], [0, 0, 1, 1], [], []>} : vector<8x8xf32>, vector<8x8xf32>, vector<8x8xf32> -> vector<8x8xf32>
    %c0_37 = arith.constant 0 : index
    %c24 = arith.constant 24 : index
    %94 = vector.load %arg8[%c0_37, %c24] : memref<8x32xf32, #tpu.memory_space<vmem>>, vector<8x8xf32>
    tpu.vector_store %arg8[%c0_37, %c24], %93 {strides = array<i32>} : memref<8x32xf32, #tpu.memory_space<vmem>>, vector<8x8xf32>,
    %c0_38 = arith.constant 0 : index
    %c0_39 = arith.constant 0 : index
    %95 = vector.load %arg8[%c0_38, %c0_39] : memref<8x32xf32, #tpu.memory_space<vmem>>, vector<8x32xf32>
    %cst_40 = arith.constant dense<0.000000e+00> : vector<8x32xf32>
    %96 = tpu.matmul %95, %2, %cst_40 {dimension_numbers = #tpu.dot_dimension_numbers<[1], [0], [0], [1], [0, 0, 1, 1], [], []>} : vector<8x32xf32>, vector<32x32xf32>, vector<8x32xf32> -> vector<8x32xf32>
    %97 = vector.broadcast %3 : vector<1x32xf32> to vector<8x32xf32>
    %98 = arith.addf %96, %97 : vector<8x32xf32>
    %c0_41 = arith.constant 0 : index
    %c0_42 = arith.constant 0 : index
    %c0_43 = arith.constant 0 : index
    %99 = vector.load %arg7[%c0_41, %c0_42, %c0_43] : memref<2x8x32xf32, #tpu.memory_space<vmem>>, vector<1x8x32xf32>
    %100 = vector.shape_cast %99 : vector<1x8x32xf32> to vector<8x32xf32>
    %101 = vector.shape_cast %98 : vector<8x32xf32> to vector<1x8x32xf32>
    tpu.vector_store %arg7[%c0_41, %c0_42, %c0_43], %101 {strides = array<i32>} : memref<2x8x32xf32, #tpu.memory_space<vmem>>, vector<1x8x32xf32>,
    %c1 = arith.constant 1 : index
    %c0_44 = arith.constant 0 : index
    %c0_45 = arith.constant 0 : index
    %102 = vector.load %arg1[%c1, %c0_44, %c0_45] : memref<2x8x32xf32, #tpu.memory_space<vmem>>, vector<1x8x32xf32>
    %103 = vector.shape_cast %102 : vector<1x8x32xf32> to vector<8x32xf32>
    %cst_46 = arith.constant dense<0.000000e+00> : vector<8x96xf32>
    %104 = tpu.matmul %103, %0, %cst_46 {dimension_numbers = #tpu.dot_dimension_numbers<[1], [0], [0], [1], [0, 0, 1, 1], [], []>} : vector<8x32xf32>, vector<32x96xf32>, vector<8x96xf32> -> vector<8x96xf32>
    %105 = vector.broadcast %1 : vector<1x96xf32> to vector<8x96xf32>
    %106 = arith.addf %104, %105 : vector<8x96xf32>
    %c1_47 = arith.constant 1 : index
    %c0_48 = arith.constant 0 : index
    %c0_49 = arith.constant 0 : index
    %107 = vector.load %arg6[%c1_47, %c0_48, %c0_49] : memref<2x8x8xf32, #tpu.memory_space<vmem>>, vector<1x8x8xf32>
    %108 = vector.shape_cast %107 : vector<1x8x8xf32> to vector<8x8xf32>
    %109 = vector.extract_strided_slice %106 {offsets = [0, 0], sizes = [8, 8], strides = [1, 1]} : vector<8x96xf32> to vector<8x8xf32>
    %110 = vector.extract_strided_slice %106 {offsets = [0, 32], sizes = [8, 8], strides = [1, 1]} : vector<8x96xf32> to vector<8x8xf32>
    %111 = vector.extract_strided_slice %106 {offsets = [0, 64], sizes = [8, 8], strides = [1, 1]} : vector<8x96xf32> to vector<8x8xf32>
    %cst_50 = arith.constant dense<0.000000e+00> : vector<8x8xf32>
    %112 = tpu.matmul %109, %110, %cst_50 {dimension_numbers = #tpu.dot_dimension_numbers<[1], [1], [0], [0], [0, 0, 1, 0], [], []>} : vector<8x8xf32>, vector<8x8xf32>, vector<8x8xf32> -> vector<8x8xf32>
    %113 = arith.addf %112, %108 : vector<8x8xf32>
    %cst_51 = arith.constant dense<0xFF800000> : vector<8xf32>
    %114 = vector.multi_reduction <maximumf>, %113, %cst_51 [1] : vector<8x8xf32> to vector<8xf32>
    %115 = vector.shape_cast %114 : vector<8xf32> to vector<8x1xf32>
    %116 = vector.broadcast %115 : vector<8x1xf32> to vector<8x8xf32>
    %117 = arith.subf %113, %116 : vector<8x8xf32>
    %118 = math.exp %117 : vector<8x8xf32>
    %cst_52 = arith.constant dense<0.000000e+00> : vector<8xf32>
    %119 = vector.multi_reduction <add>, %118, %cst_52 [1] : vector<8x8xf32> to vector<8xf32>
    %120 = vector.shape_cast %119 : vector<8xf32> to vector<8x1xf32>
    %121 = tpu.reciprocal %120 {approx = true} : vector<8x1xf32> -> vector<8x1xf32>
    %122 = arith.mulf %120, %121 : vector<8x1xf32>
    %cst_53 = arith.constant 2.000000e+00 : f32
    %123 = vector.broadcast %cst_53 : f32 to vector<8x1xf32>
    %124 = arith.subf %123, %122 : vector<8x1xf32>
    %125 = arith.mulf %121, %124 : vector<8x1xf32>
    %126 = vector.broadcast %125 : vector<8x1xf32> to vector<8x8xf32>
    %127 = arith.mulf %118, %126 : vector<8x8xf32>
    %cst_54 = arith.constant dense<0.000000e+00> : vector<8x8xf32>
    %128 = tpu.matmul %127, %111, %cst_54 {dimension_numbers = #tpu.dot_dimension_numbers<[1], [0], [0], [1], [0, 0, 1, 1], [], []>} : vector<8x8xf32>, vector<8x8xf32>, vector<8x8xf32> -> vector<8x8xf32>
    %c0_55 = arith.constant 0 : index
    %c0_56 = arith.constant 0 : index
    %129 = vector.load %arg8[%c0_55, %c0_56] : memref<8x32xf32, #tpu.memory_space<vmem>>, vector<8x8xf32>
    tpu.vector_store %arg8[%c0_55, %c0_56], %128 {strides = array<i32>} : memref<8x32xf32, #tpu.memory_space<vmem>>, vector<8x8xf32>,
    %130 = vector.extract_strided_slice %106 {offsets = [0, 8], sizes = [8, 8], strides = [1, 1]} : vector<8x96xf32> to vector<8x8xf32>
    %131 = vector.extract_strided_slice %106 {offsets = [0, 40], sizes = [8, 8], strides = [1, 1]} : vector<8x96xf32> to vector<8x8xf32>
    %132 = vector.extract_strided_slice %106 {offsets = [0, 72], sizes = [8, 8], strides = [1, 1]} : vector<8x96xf32> to vector<8x8xf32>
    %cst_57 = arith.constant dense<0.000000e+00> : vector<8x8xf32>
    %133 = tpu.matmul %130, %131, %cst_57 {dimension_numbers = #tpu.dot_dimension_numbers<[1], [1], [0], [0], [0, 0, 1, 0], [], []>} : vector<8x8xf32>, vector<8x8xf32>, vector<8x8xf32> -> vector<8x8xf32>
    %134 = arith.addf %133, %108 : vector<8x8xf32>
    %cst_58 = arith.constant dense<0xFF800000> : vector<8xf32>
    %135 = vector.multi_reduction <maximumf>, %134, %cst_58 [1] : vector<8x8xf32> to vector<8xf32>
    %136 = vector.shape_cast %135 : vector<8xf32> to vector<8x1xf32>
    %137 = vector.broadcast %136 : vector<8x1xf32> to vector<8x8xf32>
    %138 = arith.subf %134, %137 : vector<8x8xf32>
    %139 = math.exp %138 : vector<8x8xf32>
    %cst_59 = arith.constant dense<0.000000e+00> : vector<8xf32>
    %140 = vector.multi_reduction <add>, %139, %cst_59 [1] : vector<8x8xf32> to vector<8xf32>
    %141 = vector.shape_cast %140 : vector<8xf32> to vector<8x1xf32>
    %142 = tpu.reciprocal %141 {approx = true} : vector<8x1xf32> -> vector<8x1xf32>
    %143 = arith.mulf %141, %142 : vector<8x1xf32>
    %cst_60 = arith.constant 2.000000e+00 : f32
    %144 = vector.broadcast %cst_60 : f32 to vector<8x1xf32>
    %145 = arith.subf %144, %143 : vector<8x1xf32>
    %146 = arith.mulf %142, %145 : vector<8x1xf32>
    %147 = vector.broadcast %146 : vector<8x1xf32> to vector<8x8xf32>
    %148 = arith.mulf %139, %147 : vector<8x8xf32>
    %cst_61 = arith.constant dense<0.000000e+00> : vector<8x8xf32>
    %149 = tpu.matmul %148, %132, %cst_61 {dimension_numbers = #tpu.dot_dimension_numbers<[1], [0], [0], [1], [0, 0, 1, 1], [], []>} : vector<8x8xf32>, vector<8x8xf32>, vector<8x8xf32> -> vector<8x8xf32>
    %c0_62 = arith.constant 0 : index
    %c8_63 = arith.constant 8 : index
    %150 = vector.load %arg8[%c0_62, %c8_63] : memref<8x32xf32, #tpu.memory_space<vmem>>, vector<8x8xf32>
    tpu.vector_store %arg8[%c0_62, %c8_63], %149 {strides = array<i32>} : memref<8x32xf32, #tpu.memory_space<vmem>>, vector<8x8xf32>,
    %151 = vector.extract_strided_slice %106 {offsets = [0, 16], sizes = [8, 8], strides = [1, 1]} : vector<8x96xf32> to vector<8x8xf32>
    %152 = vector.extract_strided_slice %106 {offsets = [0, 48], sizes = [8, 8], strides = [1, 1]} : vector<8x96xf32> to vector<8x8xf32>
    %153 = vector.extract_strided_slice %106 {offsets = [0, 80], sizes = [8, 8], strides = [1, 1]} : vector<8x96xf32> to vector<8x8xf32>
    %cst_64 = arith.constant dense<0.000000e+00> : vector<8x8xf32>
    %154 = tpu.matmul %151, %152, %cst_64 {dimension_numbers = #tpu.dot_dimension_numbers<[1], [1], [0], [0], [0, 0, 1, 0], [], []>} : vector<8x8xf32>, vector<8x8xf32>, vector<8x8xf32> -> vector<8x8xf32>
    %155 = arith.addf %154, %108 : vector<8x8xf32>
    %cst_65 = arith.constant dense<0xFF800000> : vector<8xf32>
    %156 = vector.multi_reduction <maximumf>, %155, %cst_65 [1] : vector<8x8xf32> to vector<8xf32>
    %157 = vector.shape_cast %156 : vector<8xf32> to vector<8x1xf32>
    %158 = vector.broadcast %157 : vector<8x1xf32> to vector<8x8xf32>
    %159 = arith.subf %155, %158 : vector<8x8xf32>
    %160 = math.exp %159 : vector<8x8xf32>
    %cst_66 = arith.constant dense<0.000000e+00> : vector<8xf32>
    %161 = vector.multi_reduction <add>, %160, %cst_66 [1] : vector<8x8xf32> to vector<8xf32>
    %162 = vector.shape_cast %161 : vector<8xf32> to vector<8x1xf32>
    %163 = tpu.reciprocal %162 {approx = true} : vector<8x1xf32> -> vector<8x1xf32>
    %164 = arith.mulf %162, %163 : vector<8x1xf32>
    %cst_67 = arith.constant 2.000000e+00 : f32
    %165 = vector.broadcast %cst_67 : f32 to vector<8x1xf32>
    %166 = arith.subf %165, %164 : vector<8x1xf32>
    %167 = arith.mulf %163, %166 : vector<8x1xf32>
    %168 = vector.broadcast %167 : vector<8x1xf32> to vector<8x8xf32>
    %169 = arith.mulf %160, %168 : vector<8x8xf32>
    %cst_68 = arith.constant dense<0.000000e+00> : vector<8x8xf32>
    %170 = tpu.matmul %169, %153, %cst_68 {dimension_numbers = #tpu.dot_dimension_numbers<[1], [0], [0], [1], [0, 0, 1, 1], [], []>} : vector<8x8xf32>, vector<8x8xf32>, vector<8x8xf32> -> vector<8x8xf32>
    %c0_69 = arith.constant 0 : index
    %c16_70 = arith.constant 16 : index
    %171 = vector.load %arg8[%c0_69, %c16_70] : memref<8x32xf32, #tpu.memory_space<vmem>>, vector<8x8xf32>
    tpu.vector_store %arg8[%c0_69, %c16_70], %170 {strides = array<i32>} : memref<8x32xf32, #tpu.memory_space<vmem>>, vector<8x8xf32>,
    %172 = vector.extract_strided_slice %106 {offsets = [0, 24], sizes = [8, 8], strides = [1, 1]} : vector<8x96xf32> to vector<8x8xf32>
    %173 = vector.extract_strided_slice %106 {offsets = [0, 56], sizes = [8, 8], strides = [1, 1]} : vector<8x96xf32> to vector<8x8xf32>
    %174 = vector.extract_strided_slice %106 {offsets = [0, 88], sizes = [8, 8], strides = [1, 1]} : vector<8x96xf32> to vector<8x8xf32>
    %cst_71 = arith.constant dense<0.000000e+00> : vector<8x8xf32>
    %175 = tpu.matmul %172, %173, %cst_71 {dimension_numbers = #tpu.dot_dimension_numbers<[1], [1], [0], [0], [0, 0, 1, 0], [], []>} : vector<8x8xf32>, vector<8x8xf32>, vector<8x8xf32> -> vector<8x8xf32>
    %176 = arith.addf %175, %108 : vector<8x8xf32>
    %cst_72 = arith.constant dense<0xFF800000> : vector<8xf32>
    %177 = vector.multi_reduction <maximumf>, %176, %cst_72 [1] : vector<8x8xf32> to vector<8xf32>
    %178 = vector.shape_cast %177 : vector<8xf32> to vector<8x1xf32>
    %179 = vector.broadcast %178 : vector<8x1xf32> to vector<8x8xf32>
    %180 = arith.subf %176, %179 : vector<8x8xf32>
    %181 = math.exp %180 : vector<8x8xf32>
    %cst_73 = arith.constant dense<0.000000e+00> : vector<8xf32>
    %182 = vector.multi_reduction <add>, %181, %cst_73 [1] : vector<8x8xf32> to vector<8xf32>
    %183 = vector.shape_cast %182 : vector<8xf32> to vector<8x1xf32>
    %184 = tpu.reciprocal %183 {approx = true} : vector<8x1xf32> -> vector<8x1xf32>
    %185 = arith.mulf %183, %184 : vector<8x1xf32>
    %cst_74 = arith.constant 2.000000e+00 : f32
    %186 = vector.broadcast %cst_74 : f32 to vector<8x1xf32>
    %187 = arith.subf %186, %185 : vector<8x1xf32>
    %188 = arith.mulf %184, %187 : vector<8x1xf32>
    %189 = vector.broadcast %188 : vector<8x1xf32> to vector<8x8xf32>
    %190 = arith.mulf %181, %189 : vector<8x8xf32>
    %cst_75 = arith.constant dense<0.000000e+00> : vector<8x8xf32>
    %191 = tpu.matmul %190, %174, %cst_75 {dimension_numbers = #tpu.dot_dimension_numbers<[1], [0], [0], [1], [0, 0, 1, 1], [], []>} : vector<8x8xf32>, vector<8x8xf32>, vector<8x8xf32> -> vector<8x8xf32>
    %c0_76 = arith.constant 0 : index
    %c24_77 = arith.constant 24 : index
    %192 = vector.load %arg8[%c0_76, %c24_77] : memref<8x32xf32, #tpu.memory_space<vmem>>, vector<8x8xf32>
    tpu.vector_store %arg8[%c0_76, %c24_77], %191 {strides = array<i32>} : memref<8x32xf32, #tpu.memory_space<vmem>>, vector<8x8xf32>,
    %c0_78 = arith.constant 0 : index
    %c0_79 = arith.constant 0 : index
    %193 = vector.load %arg8[%c0_78, %c0_79] : memref<8x32xf32, #tpu.memory_space<vmem>>, vector<8x32xf32>
    %cst_80 = arith.constant dense<0.000000e+00> : vector<8x32xf32>
    %194 = tpu.matmul %193, %2, %cst_80 {dimension_numbers = #tpu.dot_dimension_numbers<[1], [0], [0], [1], [0, 0, 1, 1], [], []>} : vector<8x32xf32>, vector<32x32xf32>, vector<8x32xf32> -> vector<8x32xf32>
    %195 = vector.broadcast %3 : vector<1x32xf32> to vector<8x32xf32>
    %196 = arith.addf %194, %195 : vector<8x32xf32>
    %c1_81 = arith.constant 1 : index
    %c0_82 = arith.constant 0 : index
    %c0_83 = arith.constant 0 : index
    %197 = vector.load %arg7[%c1_81, %c0_82, %c0_83] : memref<2x8x32xf32, #tpu.memory_space<vmem>>, vector<1x8x32xf32>
    %198 = vector.shape_cast %197 : vector<1x8x32xf32> to vector<8x32xf32>
    %199 = vector.shape_cast %196 : vector<8x32xf32> to vector<1x8x32xf32>
    tpu.vector_store %arg7[%c1_81, %c0_82, %c0_83], %199 {strides = array<i32>} : memref<2x8x32xf32, #tpu.memory_space<vmem>>, vector<1x8x32xf32>,
    return
  }
  func.func @transform_0(%arg0: i32) -> (i32, i32, i32) {
    %c0_i32 = arith.constant 0 : i32
    %c0_i32_0 = arith.constant 0 : i32
    %c0_i32_1 = arith.constant 0 : i32
    return %arg0, %c0_i32, %c0_i32_0 : i32, i32, i32
  }
  func.func @transform_1(%arg0: i32) -> (i32, i32) {
    %c0_i32 = arith.constant 0 : i32
    %c0_i32_0 = arith.constant 0 : i32
    %c0_i32_1 = arith.constant 0 : i32
    return %c0_i32, %c0_i32_0 : i32, i32
  }
  func.func @transform_2(%arg0: i32) -> (i32, i32) {
    %c0_i32 = arith.constant 0 : i32
    %c0_i32_0 = arith.constant 0 : i32
    %c0_i32_1 = arith.constant 0 : i32
    return %c0_i32, %c0_i32_0 : i32, i32
  }
  func.func @transform_3(%arg0: i32) -> (i32, i32) {
    %c0_i32 = arith.constant 0 : i32
    %c0_i32_0 = arith.constant 0 : i32
    %c0_i32_1 = arith.constant 0 : i32
    return %c0_i32, %c0_i32_0 : i32, i32
  }
  func.func @transform_4(%arg0: i32) -> (i32, i32) {
    %c0_i32 = arith.constant 0 : i32
    %c0_i32_0 = arith.constant 0 : i32
    %c0_i32_1 = arith.constant 0 : i32
    return %c0_i32, %c0_i32_0 : i32, i32
  }
  func.func @transform_5(%arg0: i32) -> (i32, i32, i32) {
    %c0_i32 = arith.constant 0 : i32
    %c0_i32_0 = arith.constant 0 : i32
    %c0_i32_1 = arith.constant 0 : i32
    return %arg0, %c0_i32, %c0_i32_0 : i32, i32, i32
  }
  func.func @transform_6(%arg0: i32) -> (i32, i32, i32) {
    %c0_i32 = arith.constant 0 : i32
    %c0_i32_0 = arith.constant 0 : i32
    %c0_i32_1 = arith.constant 0 : i32
    return %arg0, %c0_i32, %c0_i32_0 : i32, i32, i32
  }
}

</mosaic_0001>

<bundles_post_ra>
// kernel: tpu_custom_call.1
= control target key start
LH: loop header
LB: loop body
LE: loop exit
PB: predicated region body
PF: predicated region fallthrough
CT: control target
= control target key end

     0   :  { %11 = vsyncpa [#allocation4], 0  ;;  %s1241_s0 = inlined_call_operand.hbm [shape: f32[2,8,32], index: 0, kind: input, shape index: {}]   ;;  %s1242_s1 = inlined_call_operand.hbm [shape: f32[32,96], index: 1, kind: input, shape index: {}]   ;;  %s1243_s2 = inlined_call_operand.vmem [shape: f32[1,96], index: 2, kind: input, shape index: {}]   ;;  %s1244_s3 = inlined_call_operand.hbm [shape: f32[32,32], index: 3, kind: input, shape index: {}]   ;;  %s1245_s4 = inlined_call_operand.vmem [shape: f32[1,32], index: 4, kind: input, shape index: {}]   ;;  %s1246_s5 = inlined_call_operand.hbm [shape: f32[2,8,8], index: 5, kind: input, shape index: {}]   ;;  %s1247_s6 = inlined_call_operand.hbm [shape: f32[2,8,32], index: 6, kind: output, shape index: {}]  }
   0x1   :  { %12 = vsyncpa [#allocation7], 0 }
   0x2   :  { %13 = vsyncpa [#allocation10], 0 }
   0x3   :  { %14 = vsyncpa [#allocation5], 0  ;;  %s32_s23 = sshll.u32 %s1242_s1, 4  ;;  %s1016_s24 = smov [#allocation6]   ;;  %s33_s23 = int_to_ptr.hbm [resolvable:$true] %s32_s23 }
   0x4   :  { %s34_s25 = sshll.u32 %s1016_s24, 4  ;;  %s19_s28 = sshll.u32 %s1241_s0, 4  ;;  %s35_s25 = int_to_ptr.vmem [resolvable:$true] %s34_s25  ;;  %s20_s28 = int_to_ptr.hbm [resolvable:$true] %s19_s28 }
   0x5   :  { %s1017_s29 = smov 128   ;;  %s1018_s30 = smov 8  }
   0x6   :  { %40 = dma.hbm_to_vmem [thread:$0]  %s33_s23, 512, %s35_s25, [#allocation7], %s1017_s29, %s1017_s29, %s1018_s30  }
   0x7   :  { %s1019_s7 = smov [#allocation3]   ;;  %s47_s1 = sshll.u32 %s1244_s3, 4  ;;  %s48_s1 = int_to_ptr.hbm [resolvable:$true] %s47_s1 }
   0x8   :  { %s21_s8 = sshll.u32 %s1019_s7, 4  ;;  %s62_s12 = sshll.u32 %s1246_s5, 4  ;;  %s22_s8 = int_to_ptr.vmem [resolvable:$true] %s21_s8  ;;  %s63_s12 = int_to_ptr.hbm [resolvable:$true] %s62_s12 }
   0x9   :  { %27 = dma.hbm_to_vmem [thread:$0]  %s20_s28, 256, %s22_s8, [#allocation4], %s1017_s29, %s1017_s29, %s1018_s30  }
   0xa   :  { %s1020_s13 = smov [#allocation8]   ;;  %s1021_s15 = smov [#allocation9]  }
   0xb   :  { %s49_s14 = sshll.u32 %s1020_s13, 4  ;;  %s64_s3 = sshll.u32 %s1021_s15, 4  ;;  %s50_s14 = int_to_ptr.vmem [resolvable:$true] %s49_s14  ;;  %s65_s3 = int_to_ptr.vmem [resolvable:$true] %s64_s3 }
   0xc   :  { %55 = dma.hbm_to_vmem [thread:$0]  %s48_s1, 512, %s50_s14, [#allocation7], %s1017_s29, %s1017_s29, %s1018_s30  }
   0xd   :  { %70 = dma.hbm_to_vmem [thread:$0]  %s63_s12, 256, %s65_s3, [#allocation10], %s1017_s29, %s1017_s29, %s1018_s30  }
   0xe   :  { %1008 = dma.done.wait [#allocation4], 256  }
   0xf   :  { %1009 = vsyncadd [#allocation4], 4294967040 }
  0x10   :  { %1010 = dma.done.wait [#allocation7], 1024  }
  0x11   :  { %1011 = vsyncadd [#allocation7], 4294966272 }
  0x12   :  { %1012 = dma.done.wait [#allocation10], 256  }
  0x13   :  { %1013 = vsyncadd [#allocation10], 4294967040  ;;  %v1095_v0 = vld [vmem:[#allocation6 + $0x18] sm:$0xff]  ;;  %v1097_v1 = vld [vmem:[#allocation6 + $0x10] sm:$0xff]  ;;  %vm101_vm0 = vcmask 261120   ;;  %s1022_s17 = smov 72  }
  0x14   :  { %117 = vmatpush.msra.mxu0 %v1095_v0  ;;  %v1100_v2 = vld [vmem:[#allocation6 + $0x8] sm:$0xff]  ;;  %v1103_v3 = vld [vmem:[#allocation6] sm:$0xff]  ;;  %v97_v4 = vld [vmem:[#allocation3] sm:$0xff]  ;;  %s1023_s18 = smov 120   ;;  %s1024_s19 = smov 96   ;;  %vm129_vm1 = vcmask 64512  }
  0x15   :  { %v1111_v5 = vld [vmem:[%s1243_s2] ss:$0 sm:$0xff]  ;;  %s1025_s20 = smov 112   ;;  %s1026_s2 = smov 80   ;;  %v125_v15 = vld [vmem:[#allocation9] sm:$0xff]  ;;  %vm267_vm2 = vcmask 130112  }
  0x16   :  { %118 = vmatpush.msra.mxu0 %v1097_v1  ;;  %s1027_s21 = smov 88   ;;  %s1028_s22 = smov 104   ;;  %vm341_vm3 = vcmask 195712   ;;  %vm415_vm4 = vcmask 261312  }
  0x17   :  { %s1029_s23 = smov 64   ;;  %s1030_s24 = smov 40  }
  0x18   :  { %119 = vmatpush.msra.mxu0 %v1100_v2  ;;  %s1031_s25 = smov 56   ;;  %s1032_s26 = smov 48  }
  0x19   :  { %s1033_s27 = smov 16   ;;  %s1034_s28 = smov 24  }
  0x1a   :  { %120 = vmatpush.msra.mxu0 %v1103_v3  ;;  %s791_s0 = sshll.u32 %s1247_s6, 4  ;;  %s792_s0 = int_to_ptr.hbm [resolvable:$true] %s791_s0 }
  0x1b   :  { %806 = vmatmul.msk.f32.vlgmr.msra.gmra.mxu0 %vm101_vm0, %v97_v4 }
  0x98   :  { %v122_v6 = vpop.f32.mrf.mxu0 }
  0x99   :  { %v1114_v7 = vadd.f32 %v1111_v5, %v122_v6 }
  0x9b   :  { %345 = vrot.lane.b32.xlu2 %v1114_v7, %s1022_s17  ;;  %195 = vrot.lane.b32.xlu1 %v1114_v7, %s1023_s18 }
  0x9c   :  { %127 = vrot.lane.b32.xlu0 %v1114_v7, %s1024_s19 }
  0xa3   :  { %269 = vrot.lane.b32.xlu2 %v1114_v7, %s1025_s20  ;;  %271 = vrot.lane.b32.xlu1 %v1114_v7, %s1026_s2 }
  0xa4   :  { %197 = vrot.lane.b32.xlu0 %v1114_v7, %s1027_s21 }
  0xac   :  { %343 = vrot.lane.b32.xlu0 %v1114_v7, %s1028_s22 }
  0xf5   :  { %v346_v8 = vpop.permute.xlu2 %345 }
  0xf6   :  { %816 = vmatpush.xpose.msk.msrb.mxu0 %vm129_vm1, %v346_v8 }
  0xfd   :  { %v270_v13 = vpop.permute.xlu2 %269 }
 0x10d   :  { %v196_v9 = vpop.permute.xlu1 %195 }
 0x10e   :  { %v128_v10 = vpop.permute.xlu0 %127 }
 0x10f   :  { %807 = vmatpush.xpose.msk.msra.mxu1 %vm129_vm1, %v128_v10 }
 0x112   :  { %808 = vmatmul.msk.f32.vlgmr.msra.gmra.mxu1 %vm129_vm1, %v1114_v7 }
 0x115   :  { %v272_v11 = vpop.permute.xlu1 %271 }
 0x116   :  { %v198_v12 = vpop.permute.xlu0 %197  ;;  %813 = vmatpush.xpose.msk.msrb.mxu1 %vm129_vm1, %v272_v11 }
 0x117   :  { %810 = vmatpush.xpose.msk.msra.mxu3 %vm129_vm1, %v198_v12 }
 0x11a   :  { %811 = vmatmul.msk.f32.vlgmr.msra.gmra.mxu3 %vm129_vm1, %v196_v9  ;;  %814 = vmatmul.msk.f32.vlgmr.msrb.gmra.mxu1 %vm129_vm1, %v270_v13 }
 0x11e   :  { %v344_v14 = vpop.permute.xlu0 %343 }
 0x11f   :  { %817 = vmatmul.msk.f32.vlgmr.msrb.gmra.mxu0 %vm129_vm1, %v344_v14 }
 0x18f   :  { %v151_v16 = vpop.f32.mrf.mxu1 }
 0x190   :  { %v152_v17 = vadd.f32 %v151_v16, %v125_v15 }
 0x192   :  { %v154_v18 = vsel %vm129_vm1, %v152_v17, -inf }
 0x193   :  { %155 = vmax.xlane.f32.xlu1 %v154_v18 }
 0x197   :  { %v294_v19 = vpop.f32.mrf.mxu1 }
 0x198   :  { %v295_v20 = vadd.f32 %v294_v19, %v125_v15 }
 0x19a   :  { %v297_v21 = vsel %vm129_vm1, %v295_v20, -inf }
 0x19b   :  { %298 = vmax.xlane.f32.xlu0 %v297_v21  ;;  %v93_v21 = vld [vmem:[#allocation8 + $0x8] sm:$0xff] }
 0x19c   :  { %v368_v25 = vpop.f32.mrf.mxu0 }
 0x19d   :  { %v220_v22 = vpop.f32.mrf.mxu3  ;;  %v369_v26 = vadd.f32 %v368_v25, %v125_v15 }
 0x19e   :  { %v221_v23 = vadd.f32 %v220_v22, %v125_v15  ;;  %v446_v15 = vld [vmem:[#allocation3 + $0x8] sm:$0xff] }
 0x19f   :  { %v371_v27 = vsel %vm129_vm1, %v369_v26, -inf }
 0x1a0   :  { %v223_v24 = vsel %vm129_vm1, %v221_v23, -inf }
 0x1a1   :  { %224 = vmax.xlane.f32.xlu2 %v223_v24 }
 0x1a9   :  { %372 = vmax.xlane.f32.xlu2 %v371_v27 }
 0x1af   :  { %168 = vrot.lane.b32.xlu0 %v1114_v7, %s1029_s23 }
 0x1b7   :  { %385 = vrot.lane.b32.xlu0 %v1114_v7, %s1030_s24 }
 0x206   :  { %v156_v28 = vpop.xlane.xlu1 %155 }
 0x207   :  { %v157_v29 = vsub.f32 %v152_v17, %v156_v28 }
 0x209   :  { %v158_v30 = vmul.f32 1.442695, %v157_v29 }
 0x20b   :  { %856 = vpow2.f32 %v158_v30 }
 0x20e   :  { %v299_v31 = vpop.xlane.xlu0 %298 }
 0x20f   :  { %v300_v32 = vsub.f32 %v295_v20, %v299_v31  ;;  %v94_v20 = vld [vmem:[#allocation8 + $0x10] sm:$0xff] }
 0x211   :  { %v857_v33 = vpop.eup %856  ;;  %v301_v34 = vmul.f32 1.442695, %v300_v32 }
 0x212   :  { %v160_v35 = vsel %vm129_vm1, %v857_v33, 0.0 }
 0x213   :  { %858 = vpow2.f32 %v301_v34  ;;  %161 = vadd.xlane.f32.xlu1 %v160_v35  ;;  %v471_v34 = vld [vmem:[#allocation9 + $0x8] sm:$0xff] }
 0x214   :  { %v225_v36 = vpop.xlane.xlu2 %224 }
 0x215   :  { %v226_v41 = vsub.f32 %v221_v23, %v225_v36  ;;  %v92_v23 = vld [vmem:[#allocation8] sm:$0xff] }
 0x217   :  { %v227_v44 = vmul.f32 1.442695, %v226_v41 }
 0x219   :  { %v859_v37 = vpop.eup %858 }
 0x21a   :  { %v303_v38 = vsel %vm129_vm1, %v859_v37, 0.0 }
 0x21b   :  { %304 = vadd.xlane.f32.xlu1 %v303_v38  ;;  %v1202_v38 = vld [vmem:[%s1245_s4] ss:$0 sm:$0xff]  ;;  %s1035_s4 = smov [#allocation11]  }
 0x21c   :  { %v373_v39 = vpop.xlane.xlu2 %372  ;;  %s789_s9 = sshll.u32 %s1035_s4, 4  ;;  %s790_s9 = int_to_ptr.vmem [resolvable:$true] %s789_s9 }
 0x21d   :  { %v374_v40 = vsub.f32 %v369_v26, %v373_v39 }
 0x21f   :  { %v375_v42 = vmul.f32 1.442695, %v374_v40 }
 0x221   :  { %860 = vpow2.f32 %v375_v42  ;;  %v169_v43 = vpop.permute.xlu0 %168 }
 0x222   :  { %189 = vmatpush.msra.mxu2 %v169_v43  ;;  %862 = vpow2.f32 %v227_v44 }
 0x227   :  { %v861_v45 = vpop.eup %860 }
 0x228   :  { %v377_v46 = vsel %vm129_vm1, %v861_v45, 0.0  ;;  %v863_v47 = vpop.eup %862 }
 0x229   :  { %378 = vadd.xlane.f32.xlu2 %v377_v46  ;;  %v229_v48 = vsel %vm129_vm1, %v863_v47, 0.0  ;;  %v386_v62 = vpop.permute.xlu0 %385 }
 0x231   :  { %230 = vadd.xlane.f32.xlu2 %v229_v48 }
 0x234   :  { %237 = vrot.lane.b32.xlu1 %v1114_v7, %s1031_s25 }
 0x249   :  { %311 = vrot.lane.b32.xlu2 %v1114_v7, %s1032_s26 }
 0x286   :  { %v162_v49 = vpop.xlane.xlu1 %161 }
 0x287   :  { %864 = vrcp.f32 %v162_v49 }
 0x28d   :  { %v865_v50 = vpop.eup %864 }
 0x28e   :  { %v164_v51 = vmul.f32 %v865_v50, %v162_v49  ;;  %v305_v54 = vpop.xlane.xlu1 %304 }
 0x28f   :  { %866 = vrcp.f32 %v305_v54 }
 0x290   :  { %v165_v52 = vsub.f32 2.0, %v164_v51 }
 0x292   :  { %v166_v53 = vmul.f32 %v865_v50, %v165_v52 }
 0x294   :  { %v167_v55 = vmul.f32 %v857_v33, %v166_v53 }
 0x295   :  { %v867_v57 = vpop.eup %866 }
 0x296   :  { %809 = vmatmul.msk.f32.vlgmr.msra.gmra.mxu2 %vm129_vm1, %v167_v55  ;;  %v307_v58 = vmul.f32 %v867_v57, %v305_v54 }
 0x298   :  { %v308_v59 = vsub.f32 2.0, %v307_v58 }
 0x29a   :  { %v309_v63 = vmul.f32 %v867_v57, %v308_v59 }
 0x29c   :  { %v379_v56 = vpop.xlane.xlu2 %378  ;;  %v310_v7 = vmul.f32 %v859_v37, %v309_v63 }
 0x29d   :  { %868 = vrcp.f32 %v379_v56 }
 0x2a3   :  { %v869_v4 = vpop.eup %868 }
 0x2a4   :  { %v231_v60 = vpop.xlane.xlu2 %230  ;;  %v381_v10 = vmul.f32 %v869_v4, %v379_v56 }
 0x2a5   :  { %870 = vrcp.f32 %v231_v60 }
 0x2a6   :  { %v238_v61 = vpop.permute.xlu1 %237  ;;  %v382_v13 = vsub.f32 2.0, %v381_v10 }
 0x2a7   :  { %258 = vmatpush.msrb.mxu2 %v238_v61 }
 0x2a8   :  { %v383_v16 = vmul.f32 %v869_v4, %v382_v13 }
 0x2a9   :  { %406 = vmatpush.msra.mxu2 %v386_v62 }
 0x2aa   :  { %v384_v17 = vmul.f32 %v861_v45, %v383_v16 }
 0x2ab   :  { %v871_v6 = vpop.eup %870 }
 0x2ac   :  { %v233_v8 = vmul.f32 %v871_v6, %v231_v60  ;;  %v312_v9 = vpop.permute.xlu2 %311 }
 0x2ad   :  { %332 = vmatpush.msrb.mxu3 %v312_v9 }
 0x2ae   :  { %v234_v11 = vsub.f32 2.0, %v233_v8  ;;  %815 = vmatmul.msk.f32.vlgmr.msrb.gmra.mxu3 %vm129_vm1, %v310_v7 }
 0x2af   :  { %462 = vmatpush.msra.mxu3 %v1095_v0 }
 0x2b0   :  { %v235_v12 = vmul.f32 %v871_v6, %v234_v11 }
 0x2b1   :  { %463 = vmatpush.msra.mxu3 %v1097_v1 }
 0x2b2   :  { %v236_v14 = vmul.f32 %v863_v47, %v235_v12 }
 0x2b3   :  { %464 = vmatpush.msra.mxu3 %v1100_v2 }
 0x2b4   :  { %812 = vmatmul.msk.f32.vlgmr.msrb.gmra.mxu2 %vm129_vm1, %v236_v14 }
 0x2b5   :  { %465 = vmatpush.msra.mxu3 %v1103_v3 }
 0x2b6   :  { %820 = vmatmul.msk.f32.vlgmr.msra.gmra.mxu3 %vm101_vm0, %v446_v15 }
 0x2bc   :  { %818 = vmatmul.msk.f32.vlgmr.msra.gmra.mxu2 %vm129_vm1, %v384_v17 }
 0x319   :  { %v191_v18 = vpop.f32.mrf.mxu2 }
 0x31a   :  { %194 = vst.msk [vmem:[#allocation2] sm:$0xff] %vm129_vm1, %v191_v18 }
 0x331   :  { %v334_v0 = vpop.f32.mrf.mxu3 }
 0x332   :  { %338 = vrot.lane.b32.xlu1 %v334_v0, %s1033_s27 }
 0x337   :  { %v260_v1 = vpop.f32.mrf.mxu2 }
 0x338   :  { %264 = vrot.lane.b32.xlu0 %v260_v1, %s1018_s30 }
 0x339   :  { %v467_v2 = vpop.f32.mrf.mxu3 }
 0x33a   :  { %v1168_v19 = vadd.f32 %v1111_v5, %v467_v2  ;;  %v95_v5 = vld [vmem:[#allocation8 + $0x18] sm:$0xff] }
 0x33b   :  { %436 = vmatpush.msra.mxu1 %v95_v5 }
 0x33c   :  { %473 = vrot.lane.b32.xlu2 %v1168_v19, %s1024_s19  ;;  %542 = vrot.lane.b32.xlu1 %v1168_v19, %s1027_s21 }
 0x33d   :  { %437 = vmatpush.msra.mxu1 %v94_v20 }
 0x33f   :  { %v408_v3 = vpop.f32.mrf.mxu2  ;;  %438 = vmatpush.msra.mxu1 %v93_v21 }
 0x340   :  { %412 = vrot.lane.b32.xlu0 %v408_v3, %s1034_s28 }
 0x341   :  { %439 = vmatpush.msra.mxu1 %v92_v23 }
 0x344   :  { %615 = vrot.lane.b32.xlu2 %v1168_v19, %s1026_s2  ;;  %688 = vrot.lane.b32.xlu1 %v1168_v19, %s1022_s17 }
 0x348   :  { %540 = vrot.lane.b32.xlu0 %v1168_v19, %s1023_s18 }
 0x34c   :  { %686 = vrot.lane.b32.xlu2 %v1168_v19, %s1028_s22 }
 0x350   :  { %613 = vrot.lane.b32.xlu0 %v1168_v19, %s1025_s20 }
 0x396   :  { %v474_v22 = vpop.permute.xlu2 %473 }
 0x397   :  { %821 = vmatpush.xpose.msk.msra.mxu0 %vm129_vm1, %v474_v22 }
 0x39a   :  { %822 = vmatmul.msk.f32.vlgmr.msra.gmra.mxu0 %vm129_vm1, %v1168_v19 }
 0x39e   :  { %v616_v24 = vpop.permute.xlu2 %615 }
 0x39f   :  { %827 = vmatpush.xpose.msk.msrb.mxu0 %vm129_vm1, %v616_v24 }
 0x3a3   :  { %775 = vmatpush.msra.mxu0 %v95_v5 }
 0x3a4   :  { %v339_v25 = vpop.permute.xlu1 %338 }
 0x3a5   :  { %776 = vmatpush.msra.mxu0 %v94_v20 }
 0x3a6   :  { %v687_v33 = vpop.permute.xlu2 %686 }
 0x3a7   :  { %777 = vmatpush.msra.mxu0 %v93_v21 }
 0x3a9   :  { %778 = vmatpush.msra.mxu0 %v92_v23 }
 0x3aa   :  { %v265_v26 = vpop.permute.xlu0 %264 }
 0x3ab   :  { %268 = vst.msk [vmem:[#allocation2] sm:$0xff] %vm267_vm2, %v265_v26 }
 0x3ac   :  { %342 = vst.msk [vmem:[#allocation2] sm:$0xff] %vm341_vm3, %v339_v25 }
 0x3ae   :  { %v543_v27 = vpop.permute.xlu1 %542 }
 0x3af   :  { %824 = vmatpush.xpose.msk.msrb.mxu1 %vm129_vm1, %v543_v27 }
 0x3b2   :  { %v413_v28 = vpop.permute.xlu0 %412 }
 0x3b3   :  { %416 = vst.msk [vmem:[#allocation2] sm:$0xff] %vm415_vm4, %v413_v28 }
 0x3b6   :  { %v689_v29 = vpop.permute.xlu1 %688 }
 0x3ba   :  { %v541_v30 = vpop.permute.xlu0 %540  ;;  %v417_v31 = vld [vmem:[#allocation2] sm:$0xff] }
 0x3bb   :  { %819 = vmatmul.msk.f32.vlgmr.msra.gmra.mxu1 %vm101_vm0, %v417_v31 }
 0x3bc   :  { %830 = vmatpush.xpose.msk.msra.mxu1 %vm129_vm1, %v689_v29 }
 0x3c2   :  { %v614_v32 = vpop.permute.xlu0 %613 }
 0x3c3   :  { %825 = vmatmul.msk.f32.vlgmr.msrb.gmra.mxu1 %vm129_vm1, %v541_v30  ;;  %828 = vmatmul.msk.f32.vlgmr.msrb.gmra.mxu0 %vm129_vm1, %v614_v32 }
 0x3cb   :  { %831 = vmatmul.msk.f32.vlgmr.msra.gmra.mxu1 %vm129_vm1, %v687_v33 }
 0x417   :  { %v496_v35 = vpop.f32.mrf.mxu0 }
 0x418   :  { %v497_v36 = vadd.f32 %v496_v35, %v471_v34 }
 0x41a   :  { %v499_v37 = vsel %vm129_vm1, %v497_v36, -inf }
 0x41b   :  { %500 = vmax.xlane.f32.xlu1 %v499_v37 }
 0x438   :  { %v441_v39 = vpop.f32.mrf.mxu1 }
 0x439   :  { %v442_v40 = vadd.f32 %v1202_v38, %v441_v39 }
 0x43b   :  { %444 = vst.msk [vmem:[#allocation11] sm:$0xff] %vm101_vm0, %v442_v40 }
 0x440   :  { %v565_v41 = vpop.f32.mrf.mxu1  ;;  %v638_v42 = vpop.f32.mrf.mxu0 }
 0x441   :  { %v566_v43 = vadd.f32 %v565_v41, %v471_v34  ;;  %v639_v44 = vadd.f32 %v638_v42, %v471_v34 }
 0x443   :  { %v568_v45 = vsel %vm129_vm1, %v566_v43, -inf  ;;  %v641_v46 = vsel %vm129_vm1, %v639_v44, -inf }
 0x444   :  { %569 = vmax.xlane.f32.xlu0 %v568_v45  ;;  %642 = vmax.xlane.f32.xlu2 %v641_v46 }
 0x448   :  { %v711_v47 = vpop.f32.mrf.mxu1 }
 0x449   :  { %v712_v48 = vadd.f32 %v711_v47, %v471_v34 }
 0x44b   :  { %v714_v49 = vsel %vm129_vm1, %v712_v48, -inf }
 0x44c   :  { %715 = vmax.xlane.f32.xlu1 %v714_v49 }
 0x45c   :  { %513 = vrot.lane.b32.xlu2 %v1168_v19, %s1029_s23 }
 0x48e   :  { %v501_v50 = vpop.xlane.xlu1 %500 }
 0x48f   :  { %v502_v51 = vsub.f32 %v497_v36, %v501_v50 }
 0x491   :  { %v503_v52 = vmul.f32 1.442695, %v502_v51 }
 0x493   :  { %872 = vpow2.f32 %v503_v52 }
 0x499   :  { %v873_v53 = vpop.eup %872 }
 0x49a   :  { %v505_v54 = vsel %vm129_vm1, %v873_v53, 0.0 }
 0x49b   :  { %506 = vadd.xlane.f32.xlu0 %v505_v54 }
 0x4b7   :  { %v643_v55 = vpop.xlane.xlu2 %642  ;;  %v570_v56 = vpop.xlane.xlu0 %569 }
 0x4b8   :  { %v644_v57 = vsub.f32 %v639_v44, %v643_v55  ;;  %v571_v58 = vsub.f32 %v566_v43, %v570_v56 }
 0x4ba   :  { %v645_v59 = vmul.f32 1.442695, %v644_v57  ;;  %v572_v60 = vmul.f32 1.442695, %v571_v58 }
 0x4bc   :  { %874 = vpow2.f32 %v645_v59 }
 0x4bd   :  { %876 = vpow2.f32 %v572_v60 }
 0x4bf   :  { %v716_v61 = vpop.xlane.xlu1 %715  ;;  %v514_v62 = vpop.permute.xlu2 %513 }
 0x4c0   :  { %v717_v63 = vsub.f32 %v712_v48, %v716_v61  ;;  %534 = vmatpush.msrb.mxu2 %v514_v62 }
 0x4c2   :  { %v875_v4 = vpop.eup %874  ;;  %v718_v6 = vmul.f32 1.442695, %v717_v63 }
 0x4c3   :  { %v877_v7 = vpop.eup %876  ;;  %v647_v8 = vsel %vm129_vm1, %v875_v4, 0.0 }
 0x4c4   :  { %878 = vpow2.f32 %v718_v6  ;;  %648 = vadd.xlane.f32.xlu1 %v647_v8  ;;  %v574_v9 = vsel %vm129_vm1, %v877_v7, 0.0 }
 0x4c5   :  { %575 = vadd.xlane.f32.xlu2 %v574_v9 }
 0x4ca   :  { %v879_v10 = vpop.eup %878 }
 0x4cb   :  { %v720_v11 = vsel %vm129_vm1, %v879_v10, 0.0 }
 0x4cc   :  { %721 = vadd.xlane.f32.xlu0 %v720_v11 }
 0x4dd   :  { %728 = vrot.lane.b32.xlu2 %v1168_v19, %s1030_s24  ;;  %582 = vrot.lane.b32.xlu1 %v1168_v19, %s1031_s25 }
 0x4e0   :  { %655 = vrot.lane.b32.xlu0 %v1168_v19, %s1032_s26 }
 0x50e   :  { %v507_v12 = vpop.xlane.xlu0 %506 }
 0x50f   :  { %880 = vrcp.f32 %v507_v12 }
 0x515   :  { %v881_v13 = vpop.eup %880 }
 0x516   :  { %v509_v14 = vmul.f32 %v881_v13, %v507_v12 }
 0x518   :  { %v510_v15 = vsub.f32 2.0, %v509_v14 }
 0x51a   :  { %v511_v16 = vmul.f32 %v881_v13, %v510_v15 }
 0x51c   :  { %v512_v17 = vmul.f32 %v873_v53, %v511_v16 }
 0x51e   :  { %823 = vmatmul.msk.f32.vlgmr.msrb.gmra.mxu2 %vm129_vm1, %v512_v17 }
 0x537   :  { %v649_v0 = vpop.xlane.xlu1 %648 }
 0x538   :  { %v576_v18 = vpop.xlane.xlu2 %575 }
 0x539   :  { %882 = vrcp.f32 %v576_v18 }
 0x53a   :  { %884 = vrcp.f32 %v649_v0 }
 0x53f   :  { %v722_v1 = vpop.xlane.xlu0 %721  ;;  %v883_v2 = vpop.eup %882 }
 0x540   :  { %886 = vrcp.f32 %v722_v1  ;;  %v885_v3 = vpop.eup %884  ;;  %v578_v5 = vmul.f32 %v883_v2, %v576_v18  ;;  %v729_v29 = vpop.permute.xlu2 %728 }
 0x541   :  { %v651_v20 = vmul.f32 %v885_v3, %v649_v0 }
 0x542   :  { %v579_v19 = vsub.f32 2.0, %v578_v5 }
 0x543   :  { %v652_v22 = vsub.f32 2.0, %v651_v20 }
 0x544   :  { %v580_v23 = vmul.f32 %v883_v2, %v579_v19 }
 0x545   :  { %v653_v25 = vmul.f32 %v885_v3, %v652_v22 }
 0x546   :  { %v887_v21 = vpop.eup %886  ;;  %v581_v26 = vmul.f32 %v877_v7, %v580_v23 }
 0x547   :  { %v724_v24 = vmul.f32 %v887_v21, %v722_v1  ;;  %v654_v30 = vmul.f32 %v875_v4, %v653_v25 }
 0x549   :  { %v725_v27 = vsub.f32 2.0, %v724_v24 }
 0x54b   :  { %v726_v32 = vmul.f32 %v887_v21, %v725_v27 }
 0x54d   :  { %v727_v33 = vmul.f32 %v879_v10, %v726_v32 }
 0x54f   :  { %v583_v28 = vpop.permute.xlu1 %582 }
 0x550   :  { %603 = vmatpush.msrb.mxu3 %v583_v28 }
 0x551   :  { %826 = vmatmul.msk.f32.vlgmr.msrb.gmra.mxu3 %vm129_vm1, %v581_v26 }
 0x552   :  { %749 = vmatpush.msra.mxu3 %v729_v29  ;;  %v656_v31 = vpop.permute.xlu0 %655 }
 0x553   :  { %676 = vmatpush.msra.mxu2 %v656_v31 }
 0x554   :  { %829 = vmatmul.msk.f32.vlgmr.msra.gmra.mxu2 %vm129_vm1, %v654_v30 }
 0x559   :  { %832 = vmatmul.msk.f32.vlgmr.msra.gmra.mxu3 %vm129_vm1, %v727_v33 }
 0x5a1   :  { %v536_v34 = vpop.f32.mrf.mxu2 }
 0x5a2   :  { %539 = vst.msk [vmem:[#allocation2] sm:$0xff] %vm129_vm1, %v536_v34 }
 0x5d4   :  { %v605_v35 = vpop.f32.mrf.mxu3 }
 0x5d5   :  { %609 = vrot.lane.b32.xlu0 %v605_v35, %s1018_s30 }
 0x5d7   :  { %v678_v36 = vpop.f32.mrf.mxu2 }
 0x5d8   :  { %682 = vrot.lane.b32.xlu1 %v678_v36, %s1033_s27 }
 0x5dc   :  { %v751_v37 = vpop.f32.mrf.mxu3 }
 0x5dd   :  { %755 = vrot.lane.b32.xlu2 %v751_v37, %s1034_s28 }
 0x637   :  { %v756_v41 = vpop.permute.xlu2 %755 }
 0x647   :  { %v610_v39 = vpop.permute.xlu0 %609 }
 0x648   :  { %612 = vst.msk [vmem:[#allocation2] sm:$0xff] %vm267_vm2, %v610_v39 }
 0x64a   :  { %v683_v40 = vpop.permute.xlu1 %682 }
 0x64b   :  { %685 = vst.msk [vmem:[#allocation2] sm:$0xff] %vm341_vm3, %v683_v40 }
 0x64c   :  { %758 = vst.msk [vmem:[#allocation2] sm:$0xff] %vm415_vm4, %v756_v41 }
 0x653   :  { %v759_v42 = vld [vmem:[#allocation2] sm:$0xff] }
 0x654   :  { %833 = vmatmul.msk.f32.vlgmr.msra.gmra.mxu0 %vm101_vm0, %v759_v42 }
 0x6d1   :  { %v780_v43 = vpop.f32.mrf.mxu0 }
 0x6d2   :  { %v781_v44 = vadd.f32 %v1202_v38, %v780_v43 }
 0x6d4   :  { %784 = vst.msk [vmem:[#allocation11 + $0x8] sm:$0xff] %vm101_vm0, %v781_v44 }
 0x6d5   :  { %797 = dma.vmem_to_hbm [thread:$0]  %s790_s9, 256, %s792_s0, [#allocation5], %s1017_s29, %s1017_s29, %s1018_s30  }
 0x6d6   :  { %1014 = dma.done.wait [#allocation5], 256  }
 0x6d7   :  { %1015 = vsyncadd [#allocation5], 4294967040 }
 0x6d8   :  { %802 = vsyncpa [#allocation4], 1 }
 0x6d9   :  { %803 = vsyncpa [#allocation7], 1 }
 0x6da   :  { %804 = vsyncpa [#allocation10], 1 }
 0x6db   :  { %805 = vsyncpa [#allocation5], 1 }

</bundles_post_ra>
